<compile_context>
chip_gen: v7x
topology: tpu7x:2x2x1
jax: 0.10.0
libtpu: 0.0.40
codegen_flags: <defaults>
</compile_context>

<pallas_src>
import functools

import jax
import jax.numpy as jnp
from jax import lax
from jax.experimental import pallas as pl
from jax.experimental.pallas import tpu as pltpu

_UNROLL_BT = 8  # per review: keep the per-image loop unrolled only when small


def _l_exp_kernel(x_ref, ah_ref, awt_ref, o_ref, *, mean_val, scale):
    # x_ref  : (bt, C, H, W)   input tile (x.dtype; bf16 goes to the MXU as bf16)
    # ah_ref : (H/p, C*H)      0/1 indicator: channel-mean + H pooling
    # awt_ref: (W, W/p)        0/1 indicator: W pooling, pre-transposed (f32)
    # o_ref  : (bt, H/p, W/p)  per-element (pooled - mean_val)^2, f32
    bt, c, h, w = x_ref.shape
    ah = ah_ref[...]          # constants, loaded once per grid step
    awt = awt_ref[...]
    mean = jnp.float32(mean_val)
    scl = jnp.float32(scale)

    def process_one(j):
        # Layout-free reshape when H % 8 == 0 (f32) / % 16 (bf16); still
        # correct otherwise (small relayout copy).
        x2d = x_ref[j].reshape(c * h, w)
        # (H/p, C*H) @ (C*H, W) -> (H/p, W): big, lane-dense (N = W) MXU matmul.
        t = jnp.dot(ah, x2d, preferred_element_type=jnp.float32)
        # (H/p, W) @ (W, W/p) -> (H/p, W/p): tiny second matmul (f32).
        pooled = jnp.dot(t, awt, preferred_element_type=jnp.float32)
        diff = pooled * scl - mean        # averaging scale applied once, in f32
        o_ref[j] = diff * diff

    if bt <= _UNROLL_BT:
        for j in range(bt):               # short static unroll: LLO-visible
            process_one(j)
    else:
        def body(j, carry):               # rolled loop: no compile-time blowup
            process_one(j)
            return carry
        lax.fori_loop(0, bt, body, 0)


def _ah_indicator(hp, c, h, patch, dtype):
    # (H/p, C*H): 1 where the flattened (c*H + h) index falls in row's window.
    k = jnp.arange(c * h)
    hh = k % h
    rows = jnp.arange(hp)[:, None]
    return ((hh // patch)[None, :] == rows).astype(dtype)


def _awt_indicator(w, wp, patch, dtype):
    # (W, W/p): 1 where w falls in column's pooling window (already transposed).
    ww = jnp.arange(w)[:, None]
    cols = jnp.arange(wp)[None, :]
    return (ww // patch == cols).astype(dtype)


def _vmem_budgets():
    # Generation-aware: v7x has 64 MiB VMEM per TC, v5e/v6e have 128 MiB.
    try:
        cap = int(pltpu.get_tpu_info().vmem_capacity_bytes)
    except Exception:  # interpret mode / unknown chip -> conservative
        cap = 64 << 20
    if cap <= (64 << 20):                 # v7x-class: leave headroom below 64 MiB
        return 24 << 20, 56 << 20         # (x-block budget, scoped-VMEM cap)
    return 48 << 20, 110 << 20            # v5e/v6e-class


def l_exp(x, patch_size, mean_val):
    B, C, H, W = x.shape
    p = int(patch_size)
    assert H % p == 0 and W % p == 0, "H and W must be divisible by patch_size"
    HP, WP = H // p, W // p

    x_block_budget, vmem_cap = _vmem_budgets()

    # Batch tile: as many images per step as the VMEM budget allows, while
    # keeping >= 2 grid steps whenever B >= 2 (v7x megacore sharding + pipelining).
    per_image = C * H * W * x.dtype.itemsize
    bt = max(1, min(B, x_block_budget // max(per_image, 1)))
    if B >= 2:
        bt = min(bt, max(1, B // 2))
    while B % bt:
        bt -= 1

    # Exact 0/1 indicators; the MXU sees bf16 operands when x is bf16.  The
    # 1/(C*p*p) scale is applied in f32 inside the kernel (never stored in bf16).
    mxu_dtype = jnp.bfloat16 if x.dtype == jnp.bfloat16 else jnp.float32
    ah = _ah_indicator(HP, C, H, p, mxu_dtype)    # (H/p, C*H)
    awt = _awt_indicator(W, WP, p, jnp.float32)   # (W, W/p)

    kernel = functools.partial(
        _l_exp_kernel, mean_val=float(mean_val), scale=1.0 / (C * p * p))

    x_blk = bt * per_image
    out_blk = bt * HP * WP * 4
    needed = (2 * x_blk                           # double-buffered input
              + ah.size * ah.dtype.itemsize       # single-buffered constants
              + awt.size * 4
              + 2 * out_blk                       # double-buffered output
              + (4 << 20))                        # compiler-internal headroom
    vmem_limit = int(min(max(needed, 32 << 20), vmem_cap))

    cost = pl.CostEstimate(
        flops=2 * B * HP * (C * H) * W + 2 * B * HP * W * WP,
        transcendentals=0,
        bytes_accessed=(B * C * H * W * x.dtype.itemsize
                        + B * HP * WP * 4
                        + ah.size * ah.dtype.itemsize + awt.size * 4),
    )

    sq = pl.pallas_call(
        kernel,
        out_shape=jax.ShapeDtypeStruct((B, HP, WP), jnp.float32),
        grid_spec=pltpu.PrefetchScalarGridSpec(
            num_scalar_prefetch=0,
            grid=(B // bt,),
            in_specs=[
                pl.BlockSpec((bt, C, H, W), lambda i: (i, 0, 0, 0)),
                # Constant index maps -> single buffer is enough.
                pl.BlockSpec((HP, C * H), lambda i: (0, 0),
                             pipeline_mode=pl.Buffered(1)),
                pl.BlockSpec((W, WP), lambda i: (0, 0),
                             pipeline_mode=pl.Buffered(1)),
            ],
            out_specs=pl.BlockSpec((bt, HP, WP), lambda i: (i, 0, 0)),
        ),
        compiler_params=pltpu.CompilerParams(
            dimension_semantics=("parallel",),    # independent per-step outputs
            vmem_limit_bytes=vmem_limit,
        ),
        cost_estimate=cost,
    )(x, ah, awt)

    # Final scalar reduction + normalization once, outside the grid loop.
    return jnp.mean(sq)


def l_exp_reference(x, patch_size, mean_val):
    B, C, H, W = x.shape
    xm = jnp.mean(x, axis=1, keepdims=True)                       # (B,1,H,W)
    pooled = xm.reshape(B, 1, H // patch_size, patch_size,
                        W // patch_size, patch_size).mean(axis=(3, 5))
    return jnp.mean((pooled - mean_val) ** 2)


if __name__ == "__main__":
    patch_size = 4
    mean_val = 0.6

    key = jax.random.PRNGKey(0)
    x = jax.random.uniform(key, (2, 4, 16, 16), dtype=jnp.float32)

    d = l_exp(x, patch_size, mean_val)
    d = jax.block_until_ready(d)

    d_ref = l_exp_reference(x, patch_size, mean_val)
    assert jnp.allclose(d, d_ref, rtol=1e-5, atol=1e-6), (d, d_ref)

    print("KERNEL_OK")
</pallas_src>

<mosaic_0001>
module attributes {stable_mosaic.version = 11 : i64} {
  func.func @_l_exp_kernel(%arg0: i32, %arg1: memref<1x4x16x16xf32, #tpu.memory_space<vmem>>, %arg2: memref<4x64xf32, #tpu.memory_space<vmem>>, %arg3: memref<16x4xf32, #tpu.memory_space<vmem>>, %arg4: memref<1x4x4xf32, #tpu.memory_space<vmem>>) attributes {dimension_semantics = [#tpu.dimension_semantics<parallel>], iteration_bounds = array<i64: 2>, scalar_prefetch = 0 : i64, scratch_operands = 0 : i64, tpu.core_type = #tpu.core_type<tc>, window_params = [{transform_indices = @transform_0, window_bounds = array<i64: 1, 4, 16, 16>}, {pipeline_mode = #tpu.pipeline_mode<synchronous>, transform_indices = @transform_1, window_bounds = array<i64: 4, 64>}, {pipeline_mode = #tpu.pipeline_mode<synchronous>, transform_indices = @transform_2, window_bounds = array<i64: 16, 4>}, {transform_indices = @transform_3, window_bounds = array<i64: 1, 4, 4>}]} {
    %c0 = arith.constant 0 : index
    %c0_0 = arith.constant 0 : index
    %0 = vector.load %arg2[%c0, %c0_0] : memref<4x64xf32, #tpu.memory_space<vmem>>, vector<4x64xf32>
    %c0_1 = arith.constant 0 : index
    %c0_2 = arith.constant 0 : index
    %1 = vector.load %arg3[%c0_1, %c0_2] : memref<16x4xf32, #tpu.memory_space<vmem>>, vector<16x4xf32>
    %c0_3 = arith.constant 0 : index
    %c0_4 = arith.constant 0 : index
    %c0_5 = arith.constant 0 : index
    %c0_6 = arith.constant 0 : index
    %2 = vector.load %arg1[%c0_3, %c0_4, %c0_5, %c0_6] : memref<1x4x16x16xf32, #tpu.memory_space<vmem>>, vector<1x4x16x16xf32>
    %3 = vector.shape_cast %2 : vector<1x4x16x16xf32> to vector<4x16x16xf32>
    %4 = vector.shape_cast %3 : vector<4x16x16xf32> to vector<64x16xf32>
    %cst = arith.constant dense<0.000000e+00> : vector<4x16xf32>
    %5 = tpu.matmul %0, %4, %cst {dimension_numbers = #tpu.dot_dimension_numbers<[1], [0], [0], [1], [0, 0, 1, 1], [], []>} : vector<4x64xf32>, vector<64x16xf32>, vector<4x16xf32> -> vector<4x16xf32>
    %cst_7 = arith.constant dense<0.000000e+00> : vector<4x4xf32>
    %6 = tpu.matmul %5, %1, %cst_7 {dimension_numbers = #tpu.dot_dimension_numbers<[1], [0], [0], [1], [0, 0, 1, 1], [], []>} : vector<4x16xf32>, vector<16x4xf32>, vector<4x4xf32> -> vector<4x4xf32>
    %cst_8 = arith.constant 1.562500e-02 : f32
    %7 = vector.broadcast %cst_8 : f32 to vector<4x4xf32>
    %8 = arith.mulf %6, %7 : vector<4x4xf32>
    %cst_9 = arith.constant 6.000000e-01 : f32
    %9 = vector.broadcast %cst_9 : f32 to vector<4x4xf32>
    %10 = arith.subf %8, %9 : vector<4x4xf32>
    %11 = arith.mulf %10, %10 : vector<4x4xf32>
    %c0_10 = arith.constant 0 : index
    %c0_11 = arith.constant 0 : index
    %c0_12 = arith.constant 0 : index
    %12 = vector.load %arg4[%c0_10, %c0_11, %c0_12] : memref<1x4x4xf32, #tpu.memory_space<vmem>>, vector<1x4x4xf32>
    %13 = vector.shape_cast %12 : vector<1x4x4xf32> to vector<4x4xf32>
    %14 = vector.shape_cast %11 : vector<4x4xf32> to vector<1x4x4xf32>
    tpu.vector_store %arg4[%c0_10, %c0_11, %c0_12], %14 {strides = array<i32>} : memref<1x4x4xf32, #tpu.memory_space<vmem>>, vector<1x4x4xf32>,
    return
  }
  func.func @transform_0(%arg0: i32) -> (i32, i32, i32, i32) {
    %c0_i32 = arith.constant 0 : i32
    %c0_i32_0 = arith.constant 0 : i32
    %c0_i32_1 = arith.constant 0 : i32
    %c0_i32_2 = arith.constant 0 : i32
    return %arg0, %c0_i32, %c0_i32_0, %c0_i32_1 : i32, i32, i32, i32
  }
  func.func @transform_1(%arg0: i32) -> (i32, i32) {
    %c0_i32 = arith.constant 0 : i32
    %c0_i32_0 = arith.constant 0 : i32
    %c0_i32_1 = arith.constant 0 : i32
    return %c0_i32, %c0_i32_0 : i32, i32
  }
  func.func @transform_2(%arg0: i32) -> (i32, i32) {
    %c0_i32 = arith.constant 0 : i32
    %c0_i32_0 = arith.constant 0 : i32
    %c0_i32_1 = arith.constant 0 : i32
    return %c0_i32, %c0_i32_0 : i32, i32
  }
  func.func @transform_3(%arg0: i32) -> (i32, i32, i32) {
    %c0_i32 = arith.constant 0 : i32
    %c0_i32_0 = arith.constant 0 : i32
    %c0_i32_1 = arith.constant 0 : i32
    return %arg0, %c0_i32, %c0_i32_0 : i32, i32, i32
  }
}

</mosaic_0001>

<bundles_post_ra>
// kernel: tpu_custom_call.1
= control target key start
LH: loop header
LB: loop body
LE: loop exit
PB: predicated region body
PF: predicated region fallthrough
CT: control target
= control target key end

     0   :  { %8 = vsyncpa [#allocation3], 0  ;;  %s853_s0 = inlined_call_operand.hbm [shape: f32[2,4,16,16], index: 0, kind: input, shape index: {}]   ;;  %s854_s1 = inlined_call_operand.vmem [shape: f32[4,64], index: 1, kind: input, shape index: {}]   ;;  %s855_s2 = inlined_call_operand.vmem [shape: f32[16,4], index: 2, kind: input, shape index: {}]   ;;  %s856_s3 = inlined_call_operand.hbm [shape: f32[2,4,4], index: 3, kind: output, shape index: {}]  }
   0x1   :  { %10 = vsyncpa [#allocation3 + $0x1], 0 }
   0x2   :  { %11 = vsyncpa [#allocation4], 0 }
   0x3   :  { %13 = vsyncpa [#allocation4 + $0x1], 0  ;;  %s683_s12 = smov 0   ;;  %s685_s13 = smov 0  }
   0x4   :  { %s687_s14 = smov 0   ;;  %s689_s15 = smov 0  }
   0x5 LB: > { %s704_s16 = sadd.s32 4294967295, %s654_s15   ;;  %s437_s17 = sadd.s32 4294967294, %s654_s15   ;;  %s654_s15 = sphi %s689_s15, %s869_s15   ;;  %s650_s14 = sphi %s687_s14, %s868_s14   ;;  %s646_s13 = sphi %s685_s13, %s867_s13   ;;  %s642_s12 = sphi %s683_s12, %s866_s12  }
   0x6   : > { %s708_s18 = sadd.s32 1, %s654_s15   ;;  %s26_s19 = sadd.s32 1, %s650_s14 }
   0x7   : > { %s23_s20 = ssub.s32 %s654_s15, %s708_s18  ;;  %p33_p0 = scmp.ne.s32.totalorder %s650_s14, %s646_s13 }
   0x8   : > { %p24_p1 = scmp.eq.s32.totalorder %s23_s20, 0  ;;  %p34_p2 = scmp.eq.s32.totalorder %s654_s15, 0 }
   0x9   : > { %p39_p3 = scmp.ne.s32.totalorder %s646_s13, %s642_s12  ;;  %p40_p4 = scmp.eq.s32.totalorder %s704_s16, 0 }
   0xa   : > { %s720_s21 = scalar_select %p24_p1, %s650_s14, %s26_s19  }
   0xb   : > { %p722_p5 = por %p34_p2, %p33_p0  ;;  %p726_p6 = por %p40_p4, %p39_p3 }
   0xc   : > { %p105_p7 = scmp.eq.s32.totalorder %s704_s16, 1  ;;  %p111_p8 = scmp.eq.s32.totalorder %s437_s17, 1 }
   0xd   : > { %p519_p10 = scmp.lt.s32.totalorder %s654_s15, 2  ;;  %s137_s26 = sand.u32 1, %s650_s14  }
   0xe   : > { %p733_p11 = por %p105_p7, %p33_p0  ;;  %p737_p12 = por %p111_p8, %p39_p3 }
   0xf   : > { %s453_s27 = sshll.u32 %s654_s15, 10  ;;  %s440_s28 = sshll.u32 %s137_s26, 6 }
  0x10   : > { %s860_s24 = scalar_select %p733_p11, 1, 0 }
  0x11   : > { %s861_s25 = scalar_select %p737_p12, 1, 0 }
  0x12   : > { %s746_s4 = scalar_lea.hbm %s853_s0, %s453_s27  ;;  %s141_s5 = scalar_lea.vmem [#allocation2], %s440_s28 }
  0x13   : > { %s148_s6 = sshll.u32 %s141_s5, 4  ;;  %p750_p13 = pnand %p519_p10, %p722_p5  ;;  %s754_s6 = int_to_ptr.vmem [resolvable:$true] %s148_s6 }
  0x14   : > { %s756_s8 = scalar_lea.sflag [#allocation3], %s137_s26  ;;  %s558_s9 = scalar_lea.hbm %s746_s4, 1024 }
  0x15   : > { %p559_p0 = scmp.ne.s32.totalorder %s746_s4, %s558_s9  ;;  %p560_p1 = pneg %p750_p13 }
  0x16   : > { %s563_s17 = scalar_lea.hbm %s853_s0, 2048  ;;  %p564_p4 = scmp.lt.u32.totalorder %s746_s4, %s853_s0 }
  0x17   : > { %p561_p2 = pnand %p560_p1, %p559_p0  ;;  %p565_p5 = scmp.lt.u32.totalorder %s563_s17, %s558_s9 }
  0x18   : > { %p567_p8 = scmp.lt.u32.totalorder %s558_s9, %s746_s4 }
  0x19   : > { %p562_p3 = pneg %p561_p2  ;;  %p566_p7 = por %p565_p5, %p564_p4 }
  0x1b   : > { %p568_p10 = por %p567_p8, %p566_p7 }
  0x1d   : > { %p569_p9 = pnand %p568_p10, %p562_p3 }
  0x1f   : > { %572 = shalt.err (!%p569_p9)
}
  0x20   : > { %s573_s22 = scalar_lea.vmem %s754_s6, 1024  ;;  %s656_s26 = smov [#allocation2]  }
  0x21   : > { %p574_p0 = scmp.ne.s32.totalorder %s754_s6, %s573_s22  ;;  %s578_s27 = sshll.u32 %s656_s26, 4  ;;  %s579_s27 = int_to_ptr.vmem [resolvable:$false] %s578_s27 }
  0x22   : > { %s580_s28 = scalar_lea.vmem %s579_s27, 2048  ;;  %p581_p11 = scmp.lt.s32.totalorder %s754_s6, %s579_s27 }
  0x23   : > { %p576_p2 = pnand %p574_p0, %p560_p1  ;;  %p582_p4 = scmp.lt.s32.totalorder %s580_s28, %s573_s22 }
  0x25   : > { %p577_p12 = pneg %p576_p2  ;;  %p583_p5 = por %p582_p4, %p581_p11 }
  0x27   : > { %p584_p7 = pnand %p583_p5, %p577_p12 }
  0x29   : > { %587 = shalt.err (!%p584_p7)
}
  0x2a   : > { %s657_s29 = smov 128   ;;  %s658_s30 = smov 8  }
  0x2b   : > { %514 = dma.hbm_to_vmem [thread:$0]  (!%p750_p13), %s746_s4, 1024, %s754_s6, %s756_s8, %s657_s29, %s657_s29, %s658_s30  }
  0x2c   : > { %p443_p9 = scmp.ge.s32.totalorder %s654_s15, 1  ;;  %p156_p1 = scmp.lt.s32.totalorder %s654_s15, 3 }
  0x2e   : > { %p157_p3 = pnand %p443_p9, %p156_p1 }
  0x2f   : > { %s787_s5 = sand.u32 (!%p157_p3), 1, %s646_s13  }
  0x30   : > { %160 = sbr.rel (%p157_p3) target bundleno = 518 (0x206), region = 32  ;;  %s444_s9 = sshll.u32 (!%p157_p3), %s787_s5, 6 }
  0x31   : > { %s163_s10 = scalar_lea.sflag (!%p157_p3), [#allocation3], %s787_s5  ;;  %s166_s11 = scalar_lea.vmem (!%p157_p3), [#allocation2], %s444_s9 }
  0x37   : > { %633 = dma.done.wait (%p726_p6), %s163_s10, 1024  }
  0x38   : > { %635 = vsyncadd (%p726_p6), %s163_s10, 4294966272  ;;  %v659_v0 = vmov 0.0|0.0   ;;  %vm660_vm0 = vmmov 0   ;;  %v661_v1 = vmov 0.0   ;;  %v192_v2 = vld [vmem:[%s166_s11] sm:$0xff]  ;;  %v193_v3 = vld [vmem:[%s166_s11 + $0x8] sm:$0xff] }
  0x39   : > { %492 = vmatprep.subr.bf16.mxu0 %v659_v0  ;;  %482 = vmatprep.mubr.msk.f32.mxu0 %vm660_vm0, %v661_v1  ;;  %v194_v4 = vld [vmem:[%s166_s11 + $0x10] sm:$0xff]  ;;  %v493_v5 = vpack.c.bf16 %v193_v3, %v192_v2  ;;  %v195_v6 = vld [vmem:[%s166_s11 + $0x18] sm:$0xff]  ;;  %v190_v8 = vld [vmem:[%s855_s2] sm:$0xff]  ;;  %vm200_vm1 = vcmask 523264   ;;  %vm274_vm2 = vcmask 130048   ;;  %s445_s19 = sshll.u32 %s787_s5, 2 }
  0x3a   : > { %504 = vmatprep.subr.bf16.mxu1 %v659_v0  ;;  %489 = vmatprep.mubr.msk.f32.mxu1 %vm660_vm0, %v661_v1  ;;  %v496_v7 = vpack.c.bf16 %v195_v6, %v194_v4  ;;  %v191_v9 = vld [vmem:[%s855_s2 + $0x8] sm:$0xff]  ;;  %v196_v10 = vld [vmem:[%s166_s11 + $0x20] sm:$0xff]  ;;  %v198_v14 = vld [vmem:[%s166_s11 + $0x30] sm:$0xff]  ;;  %s450_s20 = sshll.u32 %s704_s16, 6  ;;  %s188_s22 = scalar_lea.vmem [#allocation5], %s445_s19  ;;  %vm351_vm3 = vcmask 27648  }
  0x3b   : > { %494 = vmatpush3.bf16.msra.mxu0 %v493_v5  ;;  %v197_v11 = vld [vmem:[%s166_s11 + $0x28] sm:$0xff]  ;;  %v505_v12 = vpack.c.bf16 %v191_v9, %v190_v8  ;;  %v199_v15 = vld [vmem:[%s166_s11 + $0x38] sm:$0xff]  ;;  %v189_v17 = vld [vmem:[%s854_s1] sm:$0xf]  ;;  %s367_s26 = sshll.u32 %s188_s22, 4  ;;  %s809_s29 = scalar_lea.hbm %s856_s3, %s450_s20  ;;  %s811_s26 = int_to_ptr.vmem [resolvable:$true] %s367_s26 }
  0x3c   : > { %495 = vmatprep.subr.bf16.mxu0 %v659_v0  ;;  %v499_v13 = vpack.c.bf16 %v197_v11, %v196_v10  ;;  %v502_v16 = vpack.c.bf16 %v199_v15, %v198_v14  ;;  %s354_s30 = scalar_lea.sflag [#allocation4], %s787_s5  ;;  %s588_s9 = scalar_lea.vmem %s811_s26, 64 }
  0x3d   : > { %506 = vmatpush3.bf16.msra.mxu1 %v505_v12  ;;  %p589_p6 = scmp.ne.s32.totalorder %s811_s26, %s588_s9  ;;  %p863_p11 = scmp.ne.s32.totalorder %s860_s24, 0 }
  0x3e   : > { %s662_s16 = smov [#allocation5]  }
  0x3f   : > { %497 = vmatpush3.bf16.msra.mxu0 %v496_v7  ;;  %p590_p12 = pnand %p589_p6, %p863_p11  ;;  %s592_s10 = sshll.u32 %s662_s16, 4  ;;  %s593_s10 = int_to_ptr.vmem [resolvable:$false] %s592_s10 }
  0x40   : > { %498 = vmatprep.subr.bf16.mxu0 %v659_v0  ;;  %s594_s11 = scalar_lea.vmem %s593_s10, 128  ;;  %p595_p8 = scmp.lt.s32.totalorder %s811_s26, %s593_s10 }
  0x41   : > { %p591_p13 = pneg %p590_p12  ;;  %p596_p10 = scmp.lt.s32.totalorder %s594_s11, %s588_s9 }
  0x43   : > { %500 = vmatpush3.bf16.msra.mxu0 %v499_v13  ;;  %p597_p0 = por %p596_p10, %p595_p8 }
  0x44   : > { %501 = vmatprep.subr.bf16.mxu0 %v659_v0 }
  0x45   : > { %p598_p2 = pnand %p597_p0, %p591_p13 }
  0x47   : > { %503 = vmatpush3.bf16.msra.mxu0 %v502_v16 }
  0x4a   : > { %483 = vmatmul.mubr.msk.f32.vlgmr.msra.gmra.mrb[0].mxu0 %vm200_vm1, %v189_v17 }
 0x11d   : > { %v270_v18 = vpop.f32.mrb[0].mxu0 }
 0x11e   : > { %v484_v19 = vpop.f32.mrb[1].mxu0  ;;  %490 = vmatmul.mubr.msk.f32.vlgmr.msra.gmra.mrb[0].mxu1 %vm274_vm2, %v270_v18 }
 0x1f1   : > { %v344_v20 = vpop.f32.mrb[0].mxu1 }
 0x1f2   : > { %v348_v21 = vmul.f32 0.015625, %v344_v20  ;;  %v491_v22 = vpop.f32.mrb[1].mxu1 }
 0x1f4   : > { %v448_v23 = vadd.f32 -0.6, %v348_v21 }
 0x1f6   : > { %v350_v24 = vmul.f32 %v448_v23, %v448_v23 }
 0x1f8   : > { %352 = vst.msk [vmem:[%s188_s22] sm:$0xf] %vm351_vm3, %v350_v24 }
 0x1f9   : > { %601 = shalt.err (!%p598_p2)
}
 0x1fa   : > { %s602_s5 = scalar_lea.hbm %s809_s29, 64  ;;  %s606_s23 = scalar_lea.hbm %s856_s3, 128 }
 0x1fb   : > { %p603_p4 = scmp.ne.s32.totalorder %s809_s29, %s602_s5  ;;  %p607_p9 = scmp.lt.u32.totalorder %s809_s29, %s856_s3 }
 0x1fc   : > { %p608_p1 = scmp.lt.u32.totalorder %s606_s23, %s602_s5  ;;  %p610_p6 = scmp.lt.u32.totalorder %s602_s5, %s809_s29 }
 0x1fd   : > { %p604_p5 = pnand %p603_p4, %p863_p11 }
 0x1fe   : > { %p609_p3 = por %p608_p1, %p607_p9 }
 0x1ff   : > { %p605_p7 = pneg %p604_p5 }
 0x200   : > { %p611_p12 = por %p610_p6, %p609_p3 }
 0x202   : > { %p612_p13 = pnand %p611_p12, %p605_p7 }
 0x204   : > { %615 = shalt.err (!%p612_p13)
}
 0x205   : > { %509 = dma.vmem_to_hbm [thread:$0]  (%p863_p11), %s811_s26, 64, %s809_s29, %s354_s30  }
 0x206 PF: > { %s379_s17 = sand.u32 1, %s642_s12   ;;  %p864_p8 = scmp.ne.s32.totalorder %s861_s25, 0 }
 0x207   : > { %p865_p10 = scmp.ge.s32.totalorder %s654_s15, 2  ;;  %s380_s19 = scalar_lea.sflag [#allocation4], %s379_s17 }
 0x209   : > { %p516_p0 = pnand %p865_p10, %p864_p8 }
 0x20b   : > { %637 = dma.done.wait (!%p516_p0), %s380_s19, 64  }
 0x20c   : > { %639 = vsyncadd (!%p516_p0), %s380_s19, 4294967232  ;;  %p16_p2 = scmp.ge.s32.totalorder %s708_s18, 4   ;;  %s866_s12 = smov %s646_s13 }
 0x20d   : > { %s867_s13 = smov %s650_s14  ;;  %s868_s14 = smov %s720_s21 }
 0x20e   : > { %s869_s15 = smov %s708_s18  ;;  %18 = sbr.rel (!%p16_p2) target bundleno = 5 (0x5), region = 77 }
 0x215   :  { %385 = vsyncpa [#allocation3], 1 }
 0x216   :  { %387 = vsyncpa [#allocation3 + $0x1], 1 }
 0x217   :  { %388 = vsyncpa [#allocation4], 1 }
 0x218   :  { %390 = vsyncpa [#allocation4 + $0x1], 1 }

</bundles_post_ra>
